<compile_context>
chip_gen: v7x
topology: tpu7x:2x2x1
jax: 0.10.0
libtpu: 0.0.40
codegen_flags: <defaults>
</compile_context>

<pallas_src>
import functools

import jax
import jax.numpy as jnp
import numpy as np
from jax.experimental import pallas as pl
from jax.experimental.pallas import tpu as pltpu

# Problem sizes (small, consistent with the module's docstring example style).
B, CIN, H, W = 2, 4, 16, 16          # input (NCHW): (2, 4, 16, 16)
COUT = 8                              # conv feature channels
KH = KW = 3                           # 3x3 conv, padding=1
NCLASSES = 10                         # classifier output dim
K2CIN = KH * KW * CIN                 # 36 (im2col contraction dim)
KPAD = 40                             # 36 padded up to a multiple of 8 sublanes
M = B * H * W                         # 512 (lane-dense dim, multiple of 128)


def fused_backbone_kernel(patches_ref, wc_ref, bc_ref, pool_ref, wl_ref, bl_ref,
                          o_ref):
    """Fused Conv2d(3x3) + bias + ReLU + global-avg-pool + Linear classifier.

    patches_ref: (KPAD, M)   = (40, 512)  im2col patches, transposed (lane-dense)
    wc_ref:      (COUT, KPAD)= (8, 40)    conv weight, transposed, zero-padded
    bc_ref:      (COUT, 1)                conv bias (column, broadcasts over lanes)
    pool_ref:    (M, B)      = (512, 2)   per-batch pooling selector (0/1)
    wl_ref:      (NCLASSES, COUT)         classifier weight.T, pre-scaled 1/(H*W)
    bl_ref:      (NCLASSES, 1)            classifier bias (column)
    o_ref:       (NCLASSES, B) = (10, 2)  logits, transposed
    """
    # Conv as a single im2col matmul on the MXU: (8, 40) @ (40, 512) -> (8, 512).
    acc = jnp.dot(wc_ref[...], patches_ref[...],
                  preferred_element_type=jnp.float32)
    # Conv bias + ReLU on the VPU (column bias broadcasts across lanes).
    acc = jnp.maximum(acc + bc_ref[...], 0.0)
    # Global average pool (1/(H*W) folded into wl): (8, 512) @ (512, 2) -> (8, 2).
    pooled = jnp.dot(acc, pool_ref[...], preferred_element_type=jnp.float32)
    # Classifier: (10, 8) @ (8, 2) + (10, 1) -> (10, 2).
    o_ref[...] = (jnp.dot(wl_ref[...], pooled,
                          preferred_element_type=jnp.float32) + bl_ref[...])


def init_params(key):
    """Deterministic parameter init (mirrors Backbone._init_weights: xavier_normal
    on Linear weights, zero biases; conv gets a comparable normal init)."""
    k1, k2 = jax.random.split(key)
    std_c = (2.0 / (CIN * KH * KW + COUT)) ** 0.5
    conv_w = std_c * jax.random.normal(k1, (KH, KW, CIN, COUT), jnp.float32)
    conv_b = jnp.zeros((1, COUT), jnp.float32)
    std_l = (2.0 / (COUT + NCLASSES)) ** 0.5      # xavier_normal
    fc_w = std_l * jax.random.normal(k2, (COUT, NCLASSES), jnp.float32)
    fc_b = jnp.zeros((1, NCLASSES), jnp.float32)
    return conv_w, conv_b, fc_w, fc_b


@functools.partial(jax.jit, static_argnames=("compute_feats",))
def backbone_forward(x_nchw, params, compute_feats=False):
    """Equivalent of Backbone.forward(x, compute_feats): returns logits (B, NCLASSES).
    compute_feats only toggles host-side hook bookkeeping in PyTorch; logits
    are identical either way."""
    conv_w, conv_b, fc_w, fc_b = params

    # Layout plumbing in the wrapper (cheap XLA ops, fused under jit).
    x = jnp.transpose(x_nchw, (0, 2, 3, 1))                    # NCHW -> NHWC
    xp = jnp.pad(x, ((0, 0), (1, 1), (1, 1), (0, 0)))          # conv padding=1
    taps = [xp[:, ky:ky + H, kx:kx + W, :]
            for ky in range(KH) for kx in range(KW)]           # 9 x (B, H, W, CIN)
    patches = jnp.stack(taps, axis=3).reshape(M, K2CIN)        # (512, 36)
    patches_t = jnp.pad(patches.T,
                        ((0, KPAD - K2CIN), (0, 0)))           # (40, 512), sublane-aligned
    wc_t = jnp.pad(conv_w.reshape(K2CIN, COUT).T,
                   ((0, 0), (0, KPAD - K2CIN)))                # (8, 40), zero-padded K
    bc_col = conv_b.reshape(COUT, 1)                           # (8, 1)
    # Per-batch pooling selector; 1/(H*W) scale folded into classifier weights.
    pool_mat = (jnp.arange(M)[:, None] // (H * W)
                == jnp.arange(B)[None, :]).astype(jnp.float32)  # (512, 2)
    wl_t = (fc_w / float(H * W)).T                             # (10, 8)
    bl_col = fc_b.reshape(NCLASSES, 1)                         # (10, 1)

    flops = 2 * (COUT * KPAD * M + COUT * M * B + NCLASSES * COUT * B)
    bytes_accessed = 4 * (patches_t.size + wc_t.size + bc_col.size
                          + pool_mat.size + wl_t.size + bl_col.size
                          + NCLASSES * B)

    vmem_spec = pl.BlockSpec(memory_space=pltpu.MemorySpace.VMEM)
    logits_t = pl.pallas_call(
        fused_backbone_kernel,
        out_shape=jax.ShapeDtypeStruct((NCLASSES, B), jnp.float32),
        in_specs=[vmem_spec] * 6,
        out_specs=vmem_spec,
        cost_estimate=pl.CostEstimate(flops=flops, transcendentals=0,
                                      bytes_accessed=bytes_accessed),
    )(patches_t, wc_t, bc_col, pool_mat, wl_t, bl_col)

    return logits_t.T                                          # (B, NCLASSES)


def reference_forward(x_nchw, params):
    """Pure-JAX reference for correctness checking (same math, no Pallas)."""
    conv_w, conv_b, fc_w, fc_b = params
    x = jnp.transpose(x_nchw, (0, 2, 3, 1))
    xp = jnp.pad(x, ((0, 0), (1, 1), (1, 1), (0, 0)))
    out = jnp.zeros((B, H, W, COUT), jnp.float32)
    for ky in range(KH):
        for kx in range(KW):
            out = out + jnp.einsum('bhwc,co->bhwo',
                                   xp[:, ky:ky + H, kx:kx + W, :], conv_w[ky, kx])
    out = jnp.maximum(out + conv_b[0], 0.0)
    h = out.mean(axis=(1, 2))
    return h @ fc_w + fc_b[0]


if __name__ == "__main__":
    key = jax.random.PRNGKey(0)
    kx, kp = jax.random.split(key)
    x = jax.random.normal(kx, (B, CIN, H, W), jnp.float32)     # NCHW input
    params = init_params(kp)

    logits = jax.block_until_ready(backbone_forward(x, params))
    ref = jax.block_until_ready(reference_forward(x, params))

    assert logits.shape == (B, NCLASSES)
    np.testing.assert_allclose(np.asarray(logits), np.asarray(ref),
                               rtol=1e-4, atol=1e-4)
    # TODO(synk): hooks / get_params / get_grads are host-side PyTorch bookkeeping
    # (forward/backward hooks, parameter flattening) with no kernel equivalent.
    print("KERNEL_OK")
</pallas_src>

<mosaic_0001>
module attributes {stable_mosaic.version = 11 : i64} {
  func.func @fused_backbone_kernel(%arg0: memref<40x512xf32, #tpu.memory_space<vmem>>, %arg1: memref<8x40xf32, #tpu.memory_space<vmem>>, %arg2: memref<8x1xf32, #tpu.memory_space<vmem>>, %arg3: memref<512x2xf32, #tpu.memory_space<vmem>>, %arg4: memref<10x8xf32, #tpu.memory_space<vmem>>, %arg5: memref<10x1xf32, #tpu.memory_space<vmem>>, %arg6: memref<10x2xf32, #tpu.memory_space<vmem>>) attributes {dimension_semantics = [], scalar_prefetch = 0 : i64, scratch_operands = 0 : i64, tpu.core_type = #tpu.core_type<tc>} {
    %c0 = arith.constant 0 : index
    %c0_0 = arith.constant 0 : index
    %0 = vector.load %arg1[%c0, %c0_0] : memref<8x40xf32, #tpu.memory_space<vmem>>, vector<8x40xf32>
    %c0_1 = arith.constant 0 : index
    %c0_2 = arith.constant 0 : index
    %1 = vector.load %arg0[%c0_1, %c0_2] : memref<40x512xf32, #tpu.memory_space<vmem>>, vector<40x512xf32>
    %cst = arith.constant dense<0.000000e+00> : vector<8x512xf32>
    %2 = tpu.matmul %0, %1, %cst {dimension_numbers = #tpu.dot_dimension_numbers<[1], [0], [0], [1], [0, 0, 1, 1], [], []>} : vector<8x40xf32>, vector<40x512xf32>, vector<8x512xf32> -> vector<8x512xf32>
    %c0_3 = arith.constant 0 : index
    %c0_4 = arith.constant 0 : index
    %3 = vector.load %arg2[%c0_3, %c0_4] : memref<8x1xf32, #tpu.memory_space<vmem>>, vector<8x1xf32>
    %4 = vector.broadcast %3 : vector<8x1xf32> to vector<8x512xf32>
    %5 = arith.addf %2, %4 : vector<8x512xf32>
    %cst_5 = arith.constant 0.000000e+00 : f32
    %6 = vector.broadcast %cst_5 : f32 to vector<8x512xf32>
    %7 = arith.maximumf %5, %6 : vector<8x512xf32>
    %c0_6 = arith.constant 0 : index
    %c0_7 = arith.constant 0 : index
    %8 = vector.load %arg3[%c0_6, %c0_7] : memref<512x2xf32, #tpu.memory_space<vmem>>, vector<512x2xf32>
    %cst_8 = arith.constant dense<0.000000e+00> : vector<8x2xf32>
    %9 = tpu.matmul %7, %8, %cst_8 {dimension_numbers = #tpu.dot_dimension_numbers<[1], [0], [0], [1], [0, 0, 1, 1], [], []>} : vector<8x512xf32>, vector<512x2xf32>, vector<8x2xf32> -> vector<8x2xf32>
    %c0_9 = arith.constant 0 : index
    %c0_10 = arith.constant 0 : index
    %10 = vector.load %arg4[%c0_9, %c0_10] : memref<10x8xf32, #tpu.memory_space<vmem>>, vector<10x8xf32>
    %cst_11 = arith.constant dense<0.000000e+00> : vector<10x2xf32>
    %11 = tpu.matmul %10, %9, %cst_11 {dimension_numbers = #tpu.dot_dimension_numbers<[1], [0], [0], [1], [0, 0, 1, 1], [], []>} : vector<10x8xf32>, vector<8x2xf32>, vector<10x2xf32> -> vector<10x2xf32>
    %c0_12 = arith.constant 0 : index
    %c0_13 = arith.constant 0 : index
    %12 = vector.load %arg5[%c0_12, %c0_13] : memref<10x1xf32, #tpu.memory_space<vmem>>, vector<10x1xf32>
    %13 = vector.broadcast %12 : vector<10x1xf32> to vector<10x2xf32>
    %14 = arith.addf %11, %13 : vector<10x2xf32>
    %c0_14 = arith.constant 0 : index
    %c0_15 = arith.constant 0 : index
    %15 = vector.load %arg6[%c0_14, %c0_15] : memref<10x2xf32, #tpu.memory_space<vmem>>, vector<10x2xf32>
    tpu.vector_store %arg6[%c0_14, %c0_15], %14 {strides = array<i32>} : memref<10x2xf32, #tpu.memory_space<vmem>>, vector<10x2xf32>,
    return
  }
}

</mosaic_0001>

<bundles_post_ra>
// kernel: backbone_forward.1
= control target key start
LH: loop header
LB: loop body
LE: loop exit
PB: predicated region body
PF: predicated region fallthrough
CT: control target
= control target key end

     0   :  { %v674_v3 = vmov 0.0   ;;  %v675_v8 = vmov 0   ;;  %vm50_vm0 = vcmask 326656   ;;  %vm418_vm1 = vcmask 64512   ;;  %s989_s0 = inlined_call_operand.vmem [shape: f32[40,512], index: 0, kind: input, shape index: {}]   ;;  %s990_s2 = inlined_call_operand.vmem [shape: f32[8,1], index: 2, kind: input, shape index: {}]   ;;  %s991_s5 = inlined_call_operand.vmem [shape: f32[10,1], index: 5, kind: input, shape index: {}]   ;;  %s992_s3 = inlined_call_operand.vmem [shape: f32[512,2], index: 3, kind: input, shape index: {}]   ;;  %s993_s1 = inlined_call_operand.vmem [shape: f32[8,40], index: 1, kind: input, shape index: {}]   ;;  %s994_s4 = inlined_call_operand.vmem [shape: f32[10,8], index: 4, kind: input, shape index: {}]   ;;  %s995_s6 = inlined_call_operand.vmem [shape: f32[10,2], index: 6, kind: output, shape index: {}]  }
   0x1   :  { %v25_v0 = vld [vmem:[%s989_s0 + $0x8] sm:$0xff]  ;;  %v27_v2 = vld [vmem:[%s989_s0 + $0x18] sm:$0xff]  ;;  %118 = vmatprep.mubr.f32.mxu0 %v674_v3  ;;  %189 = vmatprep.mubr.f32.mxu1 %v674_v3  ;;  %v24_v6 = vld [vmem:[%s989_s0] sm:$0xff]  ;;  %vm502_vm2 = vcmask 9216   ;;  %vm500_vm3 = vcmask 15360  }
   0x2   :  { %v29_v1 = vld [vmem:[%s989_s0 + $0x28] sm:$0xff]  ;;  %v31_v5 = vld [vmem:[%s989_s0 + $0x38] sm:$0xff]  ;;  %v28_v7 = vld [vmem:[%s989_s0 + $0x20] sm:$0xff]  ;;  %672 = vset.pattern.permute.xlu0 %v675_v8  ;;  %673 = vset.pattern.permute.xlu1 %v675_v8 }
   0x3   :  { %v590_v4 = vpack.c.bf16 %v29_v1, %v25_v0  ;;  %v598_v9 = vpack.c.bf16 %v31_v5, %v27_v2  ;;  %v592_v10 = vpack.c.bf16 %v28_v7, %v24_v6  ;;  %v26_v11 = vld [vmem:[%s989_s0 + $0x10] sm:$0xff]  ;;  %v33_v13 = vld [vmem:[%s989_s0 + $0x48] sm:$0xff]  ;;  %v35_v16 = vld [vmem:[%s989_s0 + $0x58] sm:$0xff] }
   0x4   :  { %v30_v12 = vld [vmem:[%s989_s0 + $0x30] sm:$0xff]  ;;  %v37_v15 = vld [vmem:[%s989_s0 + $0x68] sm:$0xff]  ;;  %v39_v17 = vld [vmem:[%s989_s0 + $0x78] sm:$0xff] }
   0x5   :  { %591 = vmatprep.subr.bf16.mxu0 %v590_v4  ;;  %v600_v14 = vpack.c.bf16 %v30_v12, %v26_v11  ;;  %599 = vmatprep.subr.bf16.mxu1 %v598_v9  ;;  %v594_v18 = vpack.c.bf16 %v37_v15, %v33_v13  ;;  %v602_v19 = vpack.c.bf16 %v39_v17, %v35_v16  ;;  %v32_v20 = vld [vmem:[%s989_s0 + $0x40] sm:$0xff]  ;;  %v34_v22 = vld [vmem:[%s989_s0 + $0x50] sm:$0xff]  ;;  %v41_v26 = vld [vmem:[%s989_s0 + $0x88] sm:$0xff] }
   0x6   :  { %593 = vmatpush1.bf16.msra.mxu0 %v592_v10  ;;  %v36_v21 = vld [vmem:[%s989_s0 + $0x60] sm:$0xff]  ;;  %v38_v24 = vld [vmem:[%s989_s0 + $0x70] sm:$0xff]  ;;  %v43_v27 = vld [vmem:[%s989_s0 + $0x98] sm:$0xff] }
   0x7   :  { %601 = vmatpush1.bf16.msra.mxu1 %v600_v14  ;;  %v596_v23 = vpack.c.bf16 %v36_v21, %v32_v20  ;;  %595 = vmatprep.subr.bf16.mxu0 %v594_v18  ;;  %v604_v25 = vpack.c.bf16 %v38_v24, %v34_v22  ;;  %v40_v28 = vld [vmem:[%s989_s0 + $0x80] sm:$0xff]  ;;  %v42_v32 = vld [vmem:[%s989_s0 + $0x90] sm:$0xff]  ;;  %v217_v34 = vld [vmem:[%s992_s3 + $0x88] sm:$0xff] }
   0x8   :  { %603 = vmatprep.subr.bf16.mxu1 %v602_v19  ;;  %v44_v29 = vld [vmem:[%s990_s2] sm:$0xff]  ;;  %v249_v36 = vld [vmem:[%s992_s3 + $0x188] sm:$0xff]  ;;  %v218_v42 = vld [vmem:[%s992_s3 + $0x90] sm:$0xff] }
   0x9   :  { %v406_v30 = vld [vmem:[%s991_s5] sm:$0xff]  ;;  %47 = vperm.xlu0 %672, %v44_v29   ;;  %v201_v38 = vld [vmem:[%s992_s3 + $0x8] sm:$0xff]  ;;  %v219_v43 = vld [vmem:[%s992_s3 + $0x98] sm:$0xff] }
   0xa   :  { %v216_v31 = vld [vmem:[%s992_s3 + $0x80] sm:$0xff]  ;;  %597 = vmatpush1.bf16.msra.mxu0 %v596_v23  ;;  %v233_v41 = vld [vmem:[%s992_s3 + $0x108] sm:$0xff]  ;;  %v250_v46 = vld [vmem:[%s992_s3 + $0x190] sm:$0xff]  ;;  %v610_v49 = vpack.c.bf16 %v219_v43, %v218_v42 }
   0xb   :  { %v23_v33 = vld [vmem:[%s993_s1] sm:$0xff]  ;;  %605 = vmatpush1.bf16.msra.mxu1 %v604_v25  ;;  %62 = vmatprep.subr.mxu0 %v41_v26  ;;  %v606_v40 = vpack.c.bf16 %v217_v34, %v216_v31  ;;  %v251_v47 = vld [vmem:[%s992_s3 + $0x198] sm:$0xff]  ;;  %v202_v50 = vld [vmem:[%s992_s3 + $0x10] sm:$0xff] }
   0xc   :  { %v248_v35 = vld [vmem:[%s992_s3 + $0x180] sm:$0xff]  ;;  %133 = vmatprep.subr.mxu1 %v43_v27  ;;  %v203_v51 = vld [vmem:[%s992_s3 + $0x18] sm:$0xff]  ;;  %v234_v52 = vld [vmem:[%s992_s3 + $0x110] sm:$0xff]  ;;  %v642_v53 = vpack.c.bf16 %v251_v47, %v250_v46 }
   0xd   :  { %v200_v37 = vld [vmem:[%s992_s3] sm:$0xff]  ;;  %v638_v44 = vpack.c.bf16 %v249_v36, %v248_v35  ;;  %410 = vperm.xlu0 %672, %v406_v30   ;;  %v235_v54 = vld [vmem:[%s992_s3 + $0x118] sm:$0xff]  ;;  %v221_v56 = vld [vmem:[%s992_s3 + $0xa8] sm:$0xff]  ;;  %v612_v59 = vpack.c.bf16 %v203_v51, %v202_v50 }
   0xe   :  { %v232_v39 = vld [vmem:[%s992_s3 + $0x100] sm:$0xff]  ;;  %v608_v45 = vpack.c.bf16 %v201_v38, %v200_v37  ;;  %63 = vmatpush1.msra.mxu0 %v40_v28  ;;  %v253_v58 = vld [vmem:[%s992_s3 + $0x1a8] sm:$0xff]  ;;  %v644_v60 = vpack.c.bf16 %v235_v54, %v234_v52  ;;  %v222_v3 = vld [vmem:[%s992_s3 + $0xb0] sm:$0xff] }
   0xf   :  { %v640_v48 = vpack.c.bf16 %v233_v41, %v232_v39  ;;  %134 = vmatpush1.msra.mxu1 %v42_v32  ;;  %508 = vmatmul.mubr.msk.f32.vlgmr.msra.gmra.mrb[0].mxu0 %vm50_vm0, %v23_v33  ;;  %v220_v55 = vld [vmem:[%s992_s3 + $0xa0] sm:$0xff]  ;;  %v205_v63 = vld [vmem:[%s992_s3 + $0x28] sm:$0xff]  ;;  %v223_v4 = vld [vmem:[%s992_s3 + $0xb8] sm:$0xff] }
  0x10   :  { %509 = vmatmul.mubr.msk.f32.vlgmr.msra.gmra.mrb[0].mxu1 %vm50_vm0, %v23_v33  ;;  %607 = vmatprep.subr.bf16.mxu0 %v606_v40  ;;  %v252_v57 = vld [vmem:[%s992_s3 + $0x1a0] sm:$0xff]  ;;  %v614_v61 = vpack.c.bf16 %v221_v56, %v220_v55  ;;  %v237_v2 = vld [vmem:[%s992_s3 + $0x128] sm:$0xff]  ;;  %v254_v5 = vld [vmem:[%s992_s3 + $0x1b0] sm:$0xff]  ;;  %v618_v9 = vpack.c.bf16 %v223_v4, %v222_v3 }
  0x11   :  { %639 = vmatprep.subr.bf16.mxu1 %v638_v44  ;;  %609 = vmatpush3.bf16.msra.mxu0 %v608_v45  ;;  %v204_v62 = vld [vmem:[%s992_s3 + $0x20] sm:$0xff]  ;;  %v646_v1 = vpack.c.bf16 %v253_v58, %v252_v57  ;;  %v255_v6 = vld [vmem:[%s992_s3 + $0x1b8] sm:$0xff]  ;;  %v206_v10 = vld [vmem:[%s992_s3 + $0x30] sm:$0xff] }
  0x12   :  { %641 = vmatpush3.bf16.msra.mxu1 %v640_v48  ;;  %611 = vmatprep.subr.bf16.mxu0 %v610_v49  ;;  %v236_v0 = vld [vmem:[%s992_s3 + $0x120] sm:$0xff]  ;;  %v616_v7 = vpack.c.bf16 %v205_v63, %v204_v62  ;;  %v207_v11 = vld [vmem:[%s992_s3 + $0x38] sm:$0xff]  ;;  %v238_v12 = vld [vmem:[%s992_s3 + $0x130] sm:$0xff]  ;;  %v650_v13 = vpack.c.bf16 %v255_v6, %v254_v5 }
  0x13   :  { %643 = vmatprep.subr.bf16.mxu1 %v642_v53  ;;  %v648_v8 = vpack.c.bf16 %v237_v2, %v236_v0  ;;  %v239_v14 = vld [vmem:[%s992_s3 + $0x138] sm:$0xff]  ;;  %v224_v15 = vld [vmem:[%s992_s3 + $0xc0] sm:$0xff]  ;;  %v225_v16 = vld [vmem:[%s992_s3 + $0xc8] sm:$0xff]  ;;  %v620_v19 = vpack.c.bf16 %v207_v11, %v206_v10 }
  0x14   :  { %v256_v17 = vld [vmem:[%s992_s3 + $0x1c0] sm:$0xff]  ;;  %v257_v18 = vld [vmem:[%s992_s3 + $0x1c8] sm:$0xff]  ;;  %v652_v20 = vpack.c.bf16 %v239_v14, %v238_v12  ;;  %v622_v21 = vpack.c.bf16 %v225_v16, %v224_v15  ;;  %v226_v27 = vld [vmem:[%s992_s3 + $0xd0] sm:$0xff] }
  0x15   :  { %613 = vmatpush3.bf16.msra.mxu0 %v612_v59  ;;  %v208_v22 = vld [vmem:[%s992_s3 + $0x40] sm:$0xff]  ;;  %v209_v23 = vld [vmem:[%s992_s3 + $0x48] sm:$0xff]  ;;  %v654_v25 = vpack.c.bf16 %v257_v18, %v256_v17  ;;  %v227_v28 = vld [vmem:[%s992_s3 + $0xd8] sm:$0xff] }
  0x16   :  { %645 = vmatpush3.bf16.msra.mxu1 %v644_v60  ;;  %615 = vmatprep.subr.bf16.mxu0 %v614_v61  ;;  %v240_v24 = vld [vmem:[%s992_s3 + $0x140] sm:$0xff]  ;;  %v241_v26 = vld [vmem:[%s992_s3 + $0x148] sm:$0xff]  ;;  %v258_v29 = vld [vmem:[%s992_s3 + $0x1d0] sm:$0xff]  ;;  %v624_v31 = vpack.c.bf16 %v209_v23, %v208_v22  ;;  %v626_v33 = vpack.c.bf16 %v227_v28, %v226_v27 }
  0x17   :  { %647 = vmatprep.subr.bf16.mxu1 %v646_v1  ;;  %v259_v30 = vld [vmem:[%s992_s3 + $0x1d8] sm:$0xff]  ;;  %v656_v32 = vpack.c.bf16 %v241_v26, %v240_v24  ;;  %v210_v34 = vld [vmem:[%s992_s3 + $0x50] sm:$0xff]  ;;  %v228_v39 = vld [vmem:[%s992_s3 + $0xe0] sm:$0xff] }
  0x18   :  { %v211_v35 = vld [vmem:[%s992_s3 + $0x58] sm:$0xff]  ;;  %v242_v36 = vld [vmem:[%s992_s3 + $0x150] sm:$0xff]  ;;  %v658_v37 = vpack.c.bf16 %v259_v30, %v258_v29  ;;  %v229_v40 = vld [vmem:[%s992_s3 + $0xe8] sm:$0xff] }
  0x19   :  { %617 = vmatpush3.bf16.msra.mxu0 %v616_v7  ;;  %v243_v38 = vld [vmem:[%s992_s3 + $0x158] sm:$0xff]  ;;  %v260_v41 = vld [vmem:[%s992_s3 + $0x1e0] sm:$0xff]  ;;  %v261_v42 = vld [vmem:[%s992_s3 + $0x1e8] sm:$0xff]  ;;  %v628_v43 = vpack.c.bf16 %v211_v35, %v210_v34  ;;  %v630_v45 = vpack.c.bf16 %v229_v40, %v228_v39 }
  0x1a   :  { %649 = vmatpush3.bf16.msra.mxu1 %v648_v8  ;;  %619 = vmatprep.subr.bf16.mxu0 %v618_v9  ;;  %v660_v44 = vpack.c.bf16 %v243_v38, %v242_v36  ;;  %v662_v46 = vpack.c.bf16 %v261_v42, %v260_v41  ;;  %v212_v47 = vld [vmem:[%s992_s3 + $0x60] sm:$0xff]  ;;  %v213_v48 = vld [vmem:[%s992_s3 + $0x68] sm:$0xff]  ;;  %v230_v53 = vld [vmem:[%s992_s3 + $0xf0] sm:$0xff] }
  0x1b   :  { %651 = vmatprep.subr.bf16.mxu1 %v650_v13  ;;  %v244_v49 = vld [vmem:[%s992_s3 + $0x160] sm:$0xff]  ;;  %v632_v50 = vpack.c.bf16 %v213_v48, %v212_v47  ;;  %v245_v51 = vld [vmem:[%s992_s3 + $0x168] sm:$0xff]  ;;  %v231_v54 = vld [vmem:[%s992_s3 + $0xf8] sm:$0xff] }
  0x1c   :  { %v664_v52 = vpack.c.bf16 %v245_v51, %v244_v49  ;;  %v262_v55 = vld [vmem:[%s992_s3 + $0x1f0] sm:$0xff]  ;;  %v634_v56 = vpack.c.bf16 %v231_v54, %v230_v53  ;;  %v263_v57 = vld [vmem:[%s992_s3 + $0x1f8] sm:$0xff]  ;;  %v404_v14 = vld [vmem:[%s994_s4] sm:$0xff] }
  0x1d   :  { %621 = vmatpush3.bf16.msra.mxu0 %v620_v19  ;;  %v214_v58 = vld [vmem:[%s992_s3 + $0x70] sm:$0xff]  ;;  %v215_v59 = vld [vmem:[%s992_s3 + $0x78] sm:$0xff]  ;;  %v666_v60 = vpack.c.bf16 %v263_v57, %v262_v55  ;;  %v407_v15 = vld [vmem:[%s991_s5 + $0x8] sm:$0x3] }
  0x1e   :  { %653 = vmatpush3.bf16.msra.mxu1 %v652_v20  ;;  %623 = vmatprep.subr.bf16.mxu0 %v622_v21  ;;  %v636_v61 = vpack.c.bf16 %v215_v59, %v214_v58  ;;  %v246_v62 = vld [vmem:[%s992_s3 + $0x170] sm:$0xff]  ;;  %v247_v63 = vld [vmem:[%s992_s3 + $0x178] sm:$0xff]  ;;  %v405_v23 = vld [vmem:[%s994_s4 + $0x8] sm:$0x3] }
  0x1f   :  { %655 = vmatprep.subr.bf16.mxu1 %v654_v25  ;;  %v668_v0 = vpack.c.bf16 %v247_v63, %v246_v62  ;;  %415 = vperm.xlu1 %673, %v407_v15  }
  0x21   :  { %625 = vmatpush3.bf16.msra.mxu0 %v624_v31 }
  0x22   :  { %657 = vmatpush3.bf16.msra.mxu1 %v656_v32  ;;  %627 = vmatprep.subr.bf16.mxu0 %v626_v33 }
  0x23   :  { %659 = vmatprep.subr.bf16.mxu1 %v658_v37 }
  0x25   :  { %629 = vmatpush3.bf16.msra.mxu0 %v628_v43 }
  0x26   :  { %661 = vmatpush3.bf16.msra.mxu1 %v660_v44  ;;  %631 = vmatprep.subr.bf16.mxu0 %v630_v45 }
  0x27   :  { %663 = vmatprep.subr.bf16.mxu1 %v662_v46 }
  0x29   :  { %633 = vmatpush3.bf16.msra.mxu0 %v632_v50 }
  0x2a   :  { %665 = vmatpush3.bf16.msra.mxu1 %v664_v52  ;;  %635 = vmatprep.subr.bf16.mxu0 %v634_v56 }
  0x2b   :  { %667 = vmatprep.subr.bf16.mxu1 %v666_v60 }
  0x2d   :  { %637 = vmatpush3.bf16.msra.mxu0 %v636_v61 }
  0x2e   :  { %669 = vmatpush3.bf16.msra.mxu1 %v668_v0 }
  0x88   :  { %v48_v1 = vpop.permute.xlu0 %47 }
  0x8c   :  { %v411_v26 = vpop.permute.xlu0 %410 }
  0x9e   :  { %v416_v24 = vpop.permute.xlu1 %415 }
  0xe2   :  { %v120_v2 = vpop.f32.mrb[0].mxu0 }
  0xe3   :  { %v121_v3 = vadd.f32 %v120_v2, %v48_v1  ;;  %v191_v4 = vpop.f32.mrb[0].mxu1  ;;  %v122_v5 = vpop.f32.mrb[1].mxu0 }
  0xe4   :  { %v192_v6 = vadd.f32 %v191_v4, %v48_v1  ;;  %v123_v7 = vadd.f32 %v122_v5, %v48_v1  ;;  %v193_v8 = vpop.f32.mrb[1].mxu1 }
  0xe5   :  { %v194_v9 = vadd.f32 %v193_v8, %v48_v1  ;;  %v196_v11 = vmax.f32 %v121_v3, 0.0 }
  0xe6   :  { %v197_v10 = vmax.f32 %v123_v7, 0.0  ;;  %v198_v13 = vmax.f32 %v192_v6, 0.0 }
  0xe7   :  { %v199_v12 = vmax.f32 %v194_v9, 0.0 }
  0xe8   :  { %328 = vmatprep.mubr.f32.mxu0 %v197_v10 }
  0xe9   :  { %398 = vmatprep.mubr.f32.mxu1 %v199_v12  ;;  %329 = vmatmul.mubr.f32.vlgmr.msra.gmra.mrb[2].mxu0 %v196_v11 }
  0xea   :  { %399 = vmatmul.mubr.f32.vlgmr.msra.gmra.mrb[2].mxu1 %v198_v13  ;;  %587 = vmatprep.mubr.msk.f32.mxu0 %vm418_vm1, %v404_v14 }
 0x1bc   :  { %v544_v16 = vpop.f32.mrb[2].mxu0 }
 0x1bd   :  { %v579_v17 = vpop.f32.mrb[2].mxu1  ;;  %v545_v18 = vpop.f32.mrb[3].mxu0 }
 0x1be   :  { %v546_v19 = vadd.f32 %v545_v18, %v544_v16  ;;  %v580_v20 = vpop.f32.mrb[3].mxu1 }
 0x1bf   :  { %v581_v21 = vadd.f32 %v580_v20, %v579_v17 }
 0x1c1   :  { %v401_v22 = vadd.f32 %v581_v21, %v546_v19 }
 0x1c3   :  { %585 = vmatprep.subr.mxu0 %v401_v22 }
 0x1c4   :  { %586 = vmatpush3.msra.mxu0 %v401_v22 }
 0x1c5   :  { %588 = vmatmul.mubr.msk.f32.vlgmr.msra.gmra.mrb[4].mxu0 %vm418_vm1, %v405_v23 }
 0x298   :  { %v589_v25 = vpop.f32.mrb[4].mxu0 }
 0x299   :  { %v491_v27 = vpop.f32.mrb[5].mxu0  ;;  %v497_v28 = vadd.f32 %v589_v25, %v416_v24 }
 0x29a   :  { %v492_v29 = vadd.f32 %v491_v27, %v411_v26 }
 0x29b   :  { %503 = vst.msk [vmem:[%s995_s6 + $0x8] sm:$0x3] %vm502_vm2, %v497_v28 }
 0x29c   :  { %501 = vst.msk [vmem:[%s995_s6] sm:$0xff] %vm500_vm3, %v492_v29 }

</bundles_post_ra>
